<compile_context>
chip_gen: v7x
topology: tpu7x:2x2x1
jax: 0.10.0
libtpu: 0.0.40
codegen_flags: <defaults>
</compile_context>

<pallas_src>
import numpy as np
import jax
import jax.numpy as jnp
from jax.experimental import pallas as pl
from jax.experimental.pallas import tpu as pltpu


def _homo_kernel(x_ref,                        # (D_in, Tn)
                 w1_ref, b1_ref,               # (H, D_in), (H, 1)    [scale folded]
                 w2_ref, b2_ref,               # (H, H),    (H, 1)    [scale folded]
                 w3_ref, b3_ref,               # (H, H),    (H, 1)    [scale folded]
                 w4_ref, b4_ref,               # (H, H),    (H, 1)    [scale folded]
                 w5t_ref, b5_ref,              # (H, D_out),(D_out,1) [unscaled]
                 o_ref):                       # (D_out, Tn)
    x = x_ref[...]                             # [D_in, Tn], lane-dense batch
    w1 = w1_ref[...]                           # [H, D_in]
    d_in = w1.shape[1]

    # ---- Layer 1: K = D_in (tiny) -> VPU rank-1 updates, skip the MXU. ----
    acc = w1[:, 0:1] * x[0:1, :]               # [H, Tn]
    for k in range(1, d_in):                   # static python loop, d_in small
        acc = acc + w1[:, k:k + 1] * x[k:k + 1, :]
    y1 = jnp.tanh(acc + b1_ref[...])

    # ---- Layers 2-4: H x H matmuls on the MXU, lane-dense activations. ----
    def lin(h, w_ref, b_ref):
        return jnp.dot(w_ref[...], h,
                       preferred_element_type=jnp.float32) + b_ref[...]

    y2 = jnp.tanh(lin(y1, w2_ref, b2_ref))
    y3 = jnp.tanh(lin(y2, w3_ref, b3_ref)) + y1      # residual
    y4 = jnp.tanh(lin(y3, w4_ref, b4_ref)) + y2      # residual

    # ---- Layer 5: only D_out (=2) output rows -> VPU mul + sublane reduce. ----
    w5t = w5t_ref[...]                         # [H, D_out]
    d_out = w5t.shape[1]
    rows = [jnp.sum(w5t[:, d:d + 1] * y4, axis=0, keepdims=True)   # [1, Tn]
            for d in range(d_out)]             # static python loop, d_out small
    y = jnp.concatenate(rows, axis=0) + b5_ref[...]                # [D_out, Tn]

    o_ref[...] = y.astype(o_ref.dtype)


def homo_forward(x, params, scale, *, tile_n=None):
    """x: [N, D_in] f32.  params in PyTorch convention (W: [out, in], b: [out])."""
    N, D_in = x.shape
    H = params["w1"].shape[0]
    D_out = params["w5"].shape[0]

    if tile_n is None:
        # Biggest lane-dense tile that still leaves >= 2 grid steps
        # (software pipelining / megacore), amortizing per-step overhead.
        for cand in (2048, 1024, 512, 256, 128):
            if N % cand == 0 and N // cand >= 2:
                tile_n = cand
                break
        else:
            tile_n = N
    assert N % tile_n == 0
    assert tile_n == N or tile_n % 128 == 0, "lane tile must be a multiple of 128"

    s = jnp.float32(scale)

    # Fold s = n*a1 into layers 1-4 (layer 5 is unscaled in the module).
    w1 = (s * params["w1"]).astype(jnp.float32)                     # [H, D_in]
    b1 = (s * params["b1"]).reshape(H, 1).astype(jnp.float32)
    w2 = (s * params["w2"]).astype(jnp.float32)                     # [H, H]
    b2 = (s * params["b2"]).reshape(H, 1).astype(jnp.float32)
    w3 = (s * params["w3"]).astype(jnp.float32)
    b3 = (s * params["b3"]).reshape(H, 1).astype(jnp.float32)
    w4 = (s * params["w4"]).astype(jnp.float32)
    b4 = (s * params["b4"]).reshape(H, 1).astype(jnp.float32)
    w5t = params["w5"].T.astype(jnp.float32)                        # [H, D_out]
    b5 = params["b5"].reshape(D_out, 1).astype(jnp.float32)

    xt = x.T                                                        # [D_in, N]

    def full_spec(shape):
        # Constant index_map -> DMA'd once, stays resident across grid steps.
        return pl.BlockSpec(shape, lambda i: (0, 0))

    in_specs = [
        pl.BlockSpec((D_in, tile_n), lambda i: (0, i)),             # x tile
        full_spec((H, D_in)), full_spec((H, 1)),                    # L1
        full_spec((H, H)),    full_spec((H, 1)),                    # L2
        full_spec((H, H)),    full_spec((H, 1)),                    # L3
        full_spec((H, H)),    full_spec((H, 1)),                    # L4
        full_spec((H, D_out)), full_spec((D_out, 1)),               # L5
    ]
    out_spec = pl.BlockSpec((D_out, tile_n), lambda i: (0, i))

    flops = 2 * N * (D_in * H + 3 * H * H + H * D_out)
    transcendentals = 4 * N * H
    bytes_accessed = 4 * (N * D_in + N * D_out
                          + D_in * H + 3 * H * H + H * D_out + 4 * H + D_out)

    fn = pl.pallas_call(
        _homo_kernel,
        out_shape=jax.ShapeDtypeStruct((D_out, N), jnp.float32),
        grid=(N // tile_n,),
        in_specs=in_specs,
        out_specs=out_spec,
        compiler_params=pltpu.CompilerParams(
            dimension_semantics=("parallel",)),
        cost_estimate=pl.CostEstimate(
            flops=flops,
            transcendentals=transcendentals,
            bytes_accessed=bytes_accessed),
    )
    yt = fn(xt, w1, b1, w2, b2, w3, b3, w4, b4, w5t, b5)            # [D_out, N]
    return yt.T                                                     # [N, D_out]


def init_params(key, D_in, H, D_out):
    """Matches torch.nn.init.normal_ stds; PyTorch convention W:[out,in], b:[out]."""
    ks = jax.random.split(key, 10)

    def wstd(fan_in, fan_out):
        return np.sqrt(2.0 / (fan_in + fan_out))

    return {
        "w1": jax.random.normal(ks[0], (H, D_in), jnp.float32) * wstd(D_in, H),
        "b1": jax.random.normal(ks[1], (H,), jnp.float32),
        "w2": jax.random.normal(ks[2], (H, H), jnp.float32) * wstd(H, H),
        "b2": jax.random.normal(ks[3], (H,), jnp.float32),
        "w3": jax.random.normal(ks[4], (H, H), jnp.float32) * wstd(H, H),
        "b3": jax.random.normal(ks[5], (H,), jnp.float32),
        "w4": jax.random.normal(ks[6], (H, H), jnp.float32) * wstd(H, H),
        "b4": jax.random.normal(ks[7], (H,), jnp.float32),
        "w5": jax.random.normal(ks[8], (D_out, H), jnp.float32) * wstd(H, D_out),
        "b5": jax.random.normal(ks[9], (D_out,), jnp.float32),
    }


def reference_forward(x, params, scale):
    s = jnp.float32(scale)
    hi = jax.lax.Precision.HIGHEST

    def lin(h, w, b):
        return jnp.dot(h, w.T, precision=hi) + b

    y1 = jnp.tanh(s * lin(x, params["w1"], params["b1"]))
    y2 = jnp.tanh(s * lin(y1, params["w2"], params["b2"]))
    y3 = jnp.tanh(s * lin(y2, params["w3"], params["b3"])) + y1
    y4 = jnp.tanh(s * lin(y3, params["w4"], params["b4"])) + y2
    return lin(y4, params["w5"], params["b5"])


if __name__ == "__main__":
    D_in, H, D_out = 4, 32, 2
    N = 256            # small demo batch; 2 lane-dense tiles of 128

    key = jax.random.PRNGKey(0)
    kx, kp = jax.random.split(key)
    x = jax.random.normal(kx, (N, D_in), jnp.float32)
    params = init_params(kp, D_in, H, D_out)

    a1 = 0.1
    n = 1.0 / a1
    scale = n * a1     # == 1.0, kept explicit to mirror the module

    y = homo_forward(x, params, scale, tile_n=128)
    y = jax.block_until_ready(y)

    y_ref = reference_forward(x, params, scale)
    np.testing.assert_allclose(np.asarray(y), np.asarray(y_ref),
                               rtol=1e-5, atol=1e-5)
    print("KERNEL_OK")
</pallas_src>

<mosaic_0001>
module attributes {stable_mosaic.version = 11 : i64} {
  func.func @_homo_kernel(%arg0: i32, %arg1: memref<4x128xf32, #tpu.memory_space<vmem>>, %arg2: memref<32x4xf32, #tpu.memory_space<vmem>>, %arg3: memref<32x1xf32, #tpu.memory_space<vmem>>, %arg4: memref<32x32xf32, #tpu.memory_space<vmem>>, %arg5: memref<32x1xf32, #tpu.memory_space<vmem>>, %arg6: memref<32x32xf32, #tpu.memory_space<vmem>>, %arg7: memref<32x1xf32, #tpu.memory_space<vmem>>, %arg8: memref<32x32xf32, #tpu.memory_space<vmem>>, %arg9: memref<32x1xf32, #tpu.memory_space<vmem>>, %arg10: memref<32x2xf32, #tpu.memory_space<vmem>>, %arg11: memref<2x1xf32, #tpu.memory_space<vmem>>, %arg12: memref<2x128xf32, #tpu.memory_space<vmem>>) attributes {dimension_semantics = [#tpu.dimension_semantics<parallel>], iteration_bounds = array<i64: 2>, scalar_prefetch = 0 : i64, scratch_operands = 0 : i64, tpu.core_type = #tpu.core_type<tc>, window_params = [{transform_indices = @transform_0, window_bounds = array<i64: 4, 128>}, {pipeline_mode = #tpu.pipeline_mode<synchronous>, transform_indices = @transform_1, window_bounds = array<i64: 32, 4>}, {pipeline_mode = #tpu.pipeline_mode<synchronous>, transform_indices = @transform_2, window_bounds = array<i64: 32, 1>}, {pipeline_mode = #tpu.pipeline_mode<synchronous>, transform_indices = @transform_3, window_bounds = array<i64: 32, 32>}, {pipeline_mode = #tpu.pipeline_mode<synchronous>, transform_indices = @transform_4, window_bounds = array<i64: 32, 1>}, {pipeline_mode = #tpu.pipeline_mode<synchronous>, transform_indices = @transform_5, window_bounds = array<i64: 32, 32>}, {pipeline_mode = #tpu.pipeline_mode<synchronous>, transform_indices = @transform_6, window_bounds = array<i64: 32, 1>}, {pipeline_mode = #tpu.pipeline_mode<synchronous>, transform_indices = @transform_7, window_bounds = array<i64: 32, 32>}, {pipeline_mode = #tpu.pipeline_mode<synchronous>, transform_indices = @transform_8, window_bounds = array<i64: 32, 1>}, {pipeline_mode = #tpu.pipeline_mode<synchronous>, transform_indices = @transform_9, window_bounds = array<i64: 32, 2>}, {pipeline_mode = #tpu.pipeline_mode<synchronous>, transform_indices = @transform_10, window_bounds = array<i64: 2, 1>}, {transform_indices = @transform_11, window_bounds = array<i64: 2, 128>}]} {
    %c0 = arith.constant 0 : index
    %c0_0 = arith.constant 0 : index
    %0 = vector.load %arg1[%c0, %c0_0] : memref<4x128xf32, #tpu.memory_space<vmem>>, vector<4x128xf32>
    %c0_1 = arith.constant 0 : index
    %c0_2 = arith.constant 0 : index
    %1 = vector.load %arg2[%c0_1, %c0_2] : memref<32x4xf32, #tpu.memory_space<vmem>>, vector<32x4xf32>
    %2 = vector.extract_strided_slice %1 {offsets = [0, 0], sizes = [32, 1], strides = [1, 1]} : vector<32x4xf32> to vector<32x1xf32>
    %3 = vector.extract_strided_slice %0 {offsets = [0, 0], sizes = [1, 128], strides = [1, 1]} : vector<4x128xf32> to vector<1x128xf32>
    %4 = vector.broadcast %2 : vector<32x1xf32> to vector<32x128xf32>
    %5 = vector.broadcast %3 : vector<1x128xf32> to vector<32x128xf32>
    %6 = arith.mulf %4, %5 : vector<32x128xf32>
    %7 = vector.extract_strided_slice %1 {offsets = [0, 1], sizes = [32, 1], strides = [1, 1]} : vector<32x4xf32> to vector<32x1xf32>
    %8 = vector.extract_strided_slice %0 {offsets = [1, 0], sizes = [1, 128], strides = [1, 1]} : vector<4x128xf32> to vector<1x128xf32>
    %9 = vector.broadcast %7 : vector<32x1xf32> to vector<32x128xf32>
    %10 = vector.broadcast %8 : vector<1x128xf32> to vector<32x128xf32>
    %11 = arith.mulf %9, %10 : vector<32x128xf32>
    %12 = arith.addf %6, %11 : vector<32x128xf32>
    %13 = vector.extract_strided_slice %1 {offsets = [0, 2], sizes = [32, 1], strides = [1, 1]} : vector<32x4xf32> to vector<32x1xf32>
    %14 = vector.extract_strided_slice %0 {offsets = [2, 0], sizes = [1, 128], strides = [1, 1]} : vector<4x128xf32> to vector<1x128xf32>
    %15 = vector.broadcast %13 : vector<32x1xf32> to vector<32x128xf32>
    %16 = vector.broadcast %14 : vector<1x128xf32> to vector<32x128xf32>
    %17 = arith.mulf %15, %16 : vector<32x128xf32>
    %18 = arith.addf %12, %17 : vector<32x128xf32>
    %19 = vector.extract_strided_slice %1 {offsets = [0, 3], sizes = [32, 1], strides = [1, 1]} : vector<32x4xf32> to vector<32x1xf32>
    %20 = vector.extract_strided_slice %0 {offsets = [3, 0], sizes = [1, 128], strides = [1, 1]} : vector<4x128xf32> to vector<1x128xf32>
    %21 = vector.broadcast %19 : vector<32x1xf32> to vector<32x128xf32>
    %22 = vector.broadcast %20 : vector<1x128xf32> to vector<32x128xf32>
    %23 = arith.mulf %21, %22 : vector<32x128xf32>
    %24 = arith.addf %18, %23 : vector<32x128xf32>
    %c0_3 = arith.constant 0 : index
    %c0_4 = arith.constant 0 : index
    %25 = vector.load %arg3[%c0_3, %c0_4] : memref<32x1xf32, #tpu.memory_space<vmem>>, vector<32x1xf32>
    %26 = vector.broadcast %25 : vector<32x1xf32> to vector<32x128xf32>
    %27 = arith.addf %24, %26 : vector<32x128xf32>
    %28 = math.tanh %27 : vector<32x128xf32>
    %c0_5 = arith.constant 0 : index
    %c0_6 = arith.constant 0 : index
    %29 = vector.load %arg4[%c0_5, %c0_6] : memref<32x32xf32, #tpu.memory_space<vmem>>, vector<32x32xf32>
    %cst = arith.constant dense<0.000000e+00> : vector<32x128xf32>
    %30 = tpu.matmul %29, %28, %cst {dimension_numbers = #tpu.dot_dimension_numbers<[1], [0], [0], [1], [0, 0, 1, 1], [], []>} : vector<32x32xf32>, vector<32x128xf32>, vector<32x128xf32> -> vector<32x128xf32>
    %c0_7 = arith.constant 0 : index
    %c0_8 = arith.constant 0 : index
    %31 = vector.load %arg5[%c0_7, %c0_8] : memref<32x1xf32, #tpu.memory_space<vmem>>, vector<32x1xf32>
    %32 = vector.broadcast %31 : vector<32x1xf32> to vector<32x128xf32>
    %33 = arith.addf %30, %32 : vector<32x128xf32>
    %34 = math.tanh %33 : vector<32x128xf32>
    %c0_9 = arith.constant 0 : index
    %c0_10 = arith.constant 0 : index
    %35 = vector.load %arg6[%c0_9, %c0_10] : memref<32x32xf32, #tpu.memory_space<vmem>>, vector<32x32xf32>
    %cst_11 = arith.constant dense<0.000000e+00> : vector<32x128xf32>
    %36 = tpu.matmul %35, %34, %cst_11 {dimension_numbers = #tpu.dot_dimension_numbers<[1], [0], [0], [1], [0, 0, 1, 1], [], []>} : vector<32x32xf32>, vector<32x128xf32>, vector<32x128xf32> -> vector<32x128xf32>
    %c0_12 = arith.constant 0 : index
    %c0_13 = arith.constant 0 : index
    %37 = vector.load %arg7[%c0_12, %c0_13] : memref<32x1xf32, #tpu.memory_space<vmem>>, vector<32x1xf32>
    %38 = vector.broadcast %37 : vector<32x1xf32> to vector<32x128xf32>
    %39 = arith.addf %36, %38 : vector<32x128xf32>
    %40 = math.tanh %39 : vector<32x128xf32>
    %41 = arith.addf %40, %28 : vector<32x128xf32>
    %c0_14 = arith.constant 0 : index
    %c0_15 = arith.constant 0 : index
    %42 = vector.load %arg8[%c0_14, %c0_15] : memref<32x32xf32, #tpu.memory_space<vmem>>, vector<32x32xf32>
    %cst_16 = arith.constant dense<0.000000e+00> : vector<32x128xf32>
    %43 = tpu.matmul %42, %41, %cst_16 {dimension_numbers = #tpu.dot_dimension_numbers<[1], [0], [0], [1], [0, 0, 1, 1], [], []>} : vector<32x32xf32>, vector<32x128xf32>, vector<32x128xf32> -> vector<32x128xf32>
    %c0_17 = arith.constant 0 : index
    %c0_18 = arith.constant 0 : index
    %44 = vector.load %arg9[%c0_17, %c0_18] : memref<32x1xf32, #tpu.memory_space<vmem>>, vector<32x1xf32>
    %45 = vector.broadcast %44 : vector<32x1xf32> to vector<32x128xf32>
    %46 = arith.addf %43, %45 : vector<32x128xf32>
    %47 = math.tanh %46 : vector<32x128xf32>
    %48 = arith.addf %47, %34 : vector<32x128xf32>
    %c0_19 = arith.constant 0 : index
    %c0_20 = arith.constant 0 : index
    %49 = vector.load %arg10[%c0_19, %c0_20] : memref<32x2xf32, #tpu.memory_space<vmem>>, vector<32x2xf32>
    %50 = vector.extract_strided_slice %49 {offsets = [0, 0], sizes = [32, 1], strides = [1, 1]} : vector<32x2xf32> to vector<32x1xf32>
    %51 = vector.broadcast %50 : vector<32x1xf32> to vector<32x128xf32>
    %52 = arith.mulf %51, %48 : vector<32x128xf32>
    %cst_21 = arith.constant dense<0.000000e+00> : vector<128xf32>
    %53 = vector.multi_reduction <add>, %52, %cst_21 [0] : vector<32x128xf32> to vector<128xf32>
    %54 = vector.shape_cast %53 : vector<128xf32> to vector<1x128xf32>
    %55 = vector.extract_strided_slice %49 {offsets = [0, 1], sizes = [32, 1], strides = [1, 1]} : vector<32x2xf32> to vector<32x1xf32>
    %56 = vector.broadcast %55 : vector<32x1xf32> to vector<32x128xf32>
    %57 = arith.mulf %56, %48 : vector<32x128xf32>
    %cst_22 = arith.constant dense<0.000000e+00> : vector<128xf32>
    %58 = vector.multi_reduction <add>, %57, %cst_22 [0] : vector<32x128xf32> to vector<128xf32>
    %59 = vector.shape_cast %58 : vector<128xf32> to vector<1x128xf32>
    %60 = tpu.concatenate %54, %59 in 0 : vector<1x128xf32>, vector<1x128xf32> -> vector<2x128xf32>
    %c0_23 = arith.constant 0 : index
    %c0_24 = arith.constant 0 : index
    %61 = vector.load %arg11[%c0_23, %c0_24] : memref<2x1xf32, #tpu.memory_space<vmem>>, vector<2x1xf32>
    %62 = vector.broadcast %61 : vector<2x1xf32> to vector<2x128xf32>
    %63 = arith.addf %60, %62 : vector<2x128xf32>
    %c0_25 = arith.constant 0 : index
    %c0_26 = arith.constant 0 : index
    %64 = vector.load %arg12[%c0_25, %c0_26] : memref<2x128xf32, #tpu.memory_space<vmem>>, vector<2x128xf32>
    tpu.vector_store %arg12[%c0_25, %c0_26], %63 {strides = array<i32>} : memref<2x128xf32, #tpu.memory_space<vmem>>, vector<2x128xf32>,
    return
  }
  func.func @transform_0(%arg0: i32) -> (i32, i32) {
    %c0_i32 = arith.constant 0 : i32
    %c0_i32_0 = arith.constant 0 : i32
    return %c0_i32, %arg0 : i32, i32
  }
  func.func @transform_1(%arg0: i32) -> (i32, i32) {
    %c0_i32 = arith.constant 0 : i32
    %c0_i32_0 = arith.constant 0 : i32
    %c0_i32_1 = arith.constant 0 : i32
    return %c0_i32, %c0_i32_0 : i32, i32
  }
  func.func @transform_2(%arg0: i32) -> (i32, i32) {
    %c0_i32 = arith.constant 0 : i32
    %c0_i32_0 = arith.constant 0 : i32
    %c0_i32_1 = arith.constant 0 : i32
    return %c0_i32, %c0_i32_0 : i32, i32
  }
  func.func @transform_3(%arg0: i32) -> (i32, i32) {
    %c0_i32 = arith.constant 0 : i32
    %c0_i32_0 = arith.constant 0 : i32
    %c0_i32_1 = arith.constant 0 : i32
    return %c0_i32, %c0_i32_0 : i32, i32
  }
  func.func @transform_4(%arg0: i32) -> (i32, i32) {
    %c0_i32 = arith.constant 0 : i32
    %c0_i32_0 = arith.constant 0 : i32
    %c0_i32_1 = arith.constant 0 : i32
    return %c0_i32, %c0_i32_0 : i32, i32
  }
  func.func @transform_5(%arg0: i32) -> (i32, i32) {
    %c0_i32 = arith.constant 0 : i32
    %c0_i32_0 = arith.constant 0 : i32
    %c0_i32_1 = arith.constant 0 : i32
    return %c0_i32, %c0_i32_0 : i32, i32
  }
  func.func @transform_6(%arg0: i32) -> (i32, i32) {
    %c0_i32 = arith.constant 0 : i32
    %c0_i32_0 = arith.constant 0 : i32
    %c0_i32_1 = arith.constant 0 : i32
    return %c0_i32, %c0_i32_0 : i32, i32
  }
  func.func @transform_7(%arg0: i32) -> (i32, i32) {
    %c0_i32 = arith.constant 0 : i32
    %c0_i32_0 = arith.constant 0 : i32
    %c0_i32_1 = arith.constant 0 : i32
    return %c0_i32, %c0_i32_0 : i32, i32
  }
  func.func @transform_8(%arg0: i32) -> (i32, i32) {
    %c0_i32 = arith.constant 0 : i32
    %c0_i32_0 = arith.constant 0 : i32
    %c0_i32_1 = arith.constant 0 : i32
    return %c0_i32, %c0_i32_0 : i32, i32
  }
  func.func @transform_9(%arg0: i32) -> (i32, i32) {
    %c0_i32 = arith.constant 0 : i32
    %c0_i32_0 = arith.constant 0 : i32
    %c0_i32_1 = arith.constant 0 : i32
    return %c0_i32, %c0_i32_0 : i32, i32
  }
  func.func @transform_10(%arg0: i32) -> (i32, i32) {
    %c0_i32 = arith.constant 0 : i32
    %c0_i32_0 = arith.constant 0 : i32
    %c0_i32_1 = arith.constant 0 : i32
    return %c0_i32, %c0_i32_0 : i32, i32
  }
  func.func @transform_11(%arg0: i32) -> (i32, i32) {
    %c0_i32 = arith.constant 0 : i32
    %c0_i32_0 = arith.constant 0 : i32
    return %c0_i32, %arg0 : i32, i32
  }
}

</mosaic_0001>

<bundles_post_ra>
// kernel: tpu_custom_call.1
= control target key start
LH: loop header
LB: loop body
LE: loop exit
PB: predicated region body
PF: predicated region fallthrough
CT: control target
= control target key end

     0   :  { %s1679_s0 = inlined_call_operand.vmem [shape: f32[4,256], index: 0, kind: input, shape index: {}]   ;;  %s1680_s1 = inlined_call_operand.vmem [shape: f32[32,4], index: 1, kind: input, shape index: {}]   ;;  %s1681_s2 = inlined_call_operand.vmem [shape: f32[32,1], index: 2, kind: input, shape index: {}]   ;;  %s1682_s3 = inlined_call_operand.vmem [shape: f32[32,32], index: 3, kind: input, shape index: {}]   ;;  %s1683_s4 = inlined_call_operand.vmem [shape: f32[32,1], index: 4, kind: input, shape index: {}]   ;;  %s1684_s5 = inlined_call_operand.vmem [shape: f32[32,32], index: 5, kind: input, shape index: {}]   ;;  %s1685_s6 = inlined_call_operand.vmem [shape: f32[32,1], index: 6, kind: input, shape index: {}]   ;;  %s1686_s7 = inlined_call_operand.vmem [shape: f32[32,32], index: 7, kind: input, shape index: {}]   ;;  %s1687_s8 = inlined_call_operand.vmem [shape: f32[32,1], index: 8, kind: input, shape index: {}]   ;;  %s1688_s9 = inlined_call_operand.vmem [shape: f32[32,2], index: 9, kind: input, shape index: {}]   ;;  %s1689_s10 = inlined_call_operand.vmem [shape: f32[2,1], index: 10, kind: input, shape index: {}]   ;;  %s1690_s11 = inlined_call_operand.hbm [shape: f32[2,256], index: 11, kind: output, shape index: {}]  }
   0x1   :  { %1691 = sst [smem:[#allocation5_spill]] %s1679_s0 }
   0x2   :  { %16 = vsyncpa [#allocation3], 0 }
   0x3   :  { %18 = vsyncpa [#allocation3 + $0x1], 0  ;;  %s1413_s17 = smov 0   ;;  %s1415_s18 = smov 0  }
   0x4   :  { %s1417_s19 = smov 0   ;;  %s1419_s20 = smov 0  }
   0x5 LB: > { %s1434_s21 = sadd.s32 4294967295, %s1346_s20   ;;  %s1076_s22 = sadd.s32 4294967294, %s1346_s20   ;;  %s1346_s20 = sphi %s1419_s20, %s1698_s20   ;;  %s1342_s19 = sphi %s1417_s19, %s1697_s19   ;;  %s1338_s18 = sphi %s1415_s18, %s1696_s18   ;;  %s1334_s17 = sphi %s1413_s17, %s1695_s17  }
   0x6   : > { %s1438_s23 = sadd.s32 1, %s1346_s20   ;;  %s267_s24 = sadd.s32 1, %s1342_s19 }
   0x7   : > { %s264_s25 = ssub.s32 %s1346_s20, %s1438_s23  ;;  %p277_p0 = scmp.ne.s32.totalorder %s1342_s19, %s1338_s18 }
   0x8   : > { %p265_p1 = scmp.eq.s32.totalorder %s264_s25, 0  ;;  %p278_p2 = scmp.eq.s32.totalorder %s1434_s21, 1 }
   0x9   : > { %p283_p3 = scmp.ne.s32.totalorder %s1338_s18, %s1334_s17  ;;  %p284_p4 = scmp.eq.s32.totalorder %s1076_s22, 1 }
   0xa   : > { %s1449_s26 = scalar_select %p265_p1, %s1342_s19, %s267_s24  }
   0xb   : > { %p1451_p5 = por %p278_p2, %p277_p0  ;;  %p1455_p6 = por %p284_p4, %p283_p3 }
   0xc   : > { %p1079_p7 = scmp.ge.s32.totalorder %s1346_s20, 1  ;;  %p339_p8 = scmp.lt.s32.totalorder %s1346_s20, 3 }
   0xe   : > { %p340_p9 = pnand %p1079_p7, %p339_p8 }
   0xf   : > { %v383_v0 = vld [vmem:[%s1680_s1] sm:$0xff] (!%p340_p9)  ;;  %v1348_v1 = vmov (!%p340_p9), 3   ;;  %v1349_v2 = vmov (!%p340_p9), 1   ;;  %v384_v3 = vld [vmem:[%s1680_s1 + $0x8] sm:$0xff] (!%p340_p9)  ;;  %v1350_v4 = vmov (!%p340_p9), 2   ;;  %v386_v5 = vld [vmem:[%s1680_s1 + $0x18] sm:$0xff] (!%p340_p9)  ;;  %v407_v33 = vlaneseq (!%p340_p9) }
  0x10   : > { %343 = sbr.rel (%p340_p9) target bundleno = 955 (0x3bb), region = 64  ;;  %1239 = vset.pattern.permute.xlu0 (!%p340_p9), %v1348_v1  ;;  %1235 = vset.pattern.permute.xlu1 (!%p340_p9), %v1349_v2  ;;  %v385_v6 = vld [vmem:[%s1680_s1 + $0x10] sm:$0xff] (!%p340_p9)  ;;  %v1351_v7 = vmov (!%p340_p9), 0   ;;  %v499_v8 = vld [vmem:[%s1681_s2] sm:$0xff] (!%p340_p9)  ;;  %v502_v9 = vld [vmem:[%s1681_s2 + $0x18] sm:$0xff] (!%p340_p9)  ;;  %vm559_vm0 = vcmask (!%p340_p9), 261120  }
  0x11   : > { %472 = vperm.xlu0 (!%p340_p9), %1239, %v383_v0   ;;  %416 = vperm.xlu1 (!%p340_p9), %1235, %v383_v0   ;;  %v536_v10 = vld [vmem:[%s1683_s4 + $0x8] sm:$0xff] (!%p340_p9)  ;;  %v538_v11 = vld [vmem:[%s1683_s4 + $0x18] sm:$0xff] (!%p340_p9)  ;;  %v501_v16 = vld [vmem:[%s1681_s2 + $0x10] sm:$0xff] (!%p340_p9)  ;;  %p378_p10 = scmp.lt.s32.totalorder (!%p340_p9), %s1434_s21, 1  ;;  %v408_v36 = vshrl.u32 (!%p340_p9), %v407_v33, 7  ;;  %s1694_s0 = sld [smem:[#allocation5_spill]] (!%p340_p9) }
  0x12   : > { %v666_v12 = vld [vmem:[%s1685_s6 + $0x8] sm:$0xff] (!%p340_p9)  ;;  %v668_v13 = vld [vmem:[%s1685_s6 + $0x18] sm:$0xff] (!%p340_p9)  ;;  %v535_v18 = vld [vmem:[%s1683_s4] sm:$0xff] (!%p340_p9)  ;;  %s375_s25 = sand.u32 (!%p340_p9), 1, %s1338_s18   ;;  %vm993_vm1 = vcmask (!%p340_p9), 1040384   ;;  %s1095_s30 = sshll.u32 (!%p340_p9), %s1434_s21, 5 }
  0x13   : > { %v500_v14 = vld [vmem:[%s1681_s2 + $0x8] sm:$0xff] (!%p340_p9)  ;;  %v801_v17 = vld [vmem:[%s1687_s8 + $0x18] sm:$0xff] (!%p340_p9)  ;;  %v537_v19 = vld [vmem:[%s1683_s4 + $0x10] sm:$0xff] (!%p340_p9)  ;;  %v409_v37 = vsub.s32 (!%p340_p9), 0, %v408_v36  ;;  %v433_v39 = vsub.s32 (!%p340_p9), 1, %v408_v36  ;;  %v461_v45 = vsub.s32 (!%p340_p9), 2, %v408_v36  ;;  %s1637_s16 = scalar_lea.hbm (!%p340_p9), %s1690_s11, %s1095_s30 }
  0x14   : > { %v799_v15 = vld [vmem:[%s1687_s8 + $0x8] sm:$0xff] (!%p340_p9)  ;;  %v665_v20 = vld [vmem:[%s1685_s6] sm:$0xff] (!%p340_p9)  ;;  %v667_v21 = vld [vmem:[%s1685_s6 + $0x10] sm:$0xff] (!%p340_p9)  ;;  %v489_v46 = vsub.s32 (!%p340_p9), 3, %v408_v36  ;;  %s1080_s29 = sshll.u32 (!%p340_p9), %s375_s25, 1  ;;  %s1004_s22 = scalar_lea.sflag (!%p340_p9), [#allocation3], %s375_s25 }
  0x15   : > { %1240 = vset.pattern.permute.xlu0 (!%p340_p9), %v1350_v4  ;;  %420 = vperm.xlu1 (!%p340_p9), %1235, %v384_v3   ;;  %v531_v22 = vld [vmem:[%s1682_s3] sm:$0xff] (!%p340_p9)  ;;  %v800_v24 = vld [vmem:[%s1687_s8 + $0x10] sm:$0xff] (!%p340_p9)  ;;  %v532_v33 = vld [vmem:[%s1682_s3 + $0x8] sm:$0xff] (!%p340_p9)  ;;  %s377_s12 = scalar_lea.vmem (!%p340_p9), [#allocation2], %s1080_s29 }
  0x16   : > { %444 = vperm.xlu0 (!%p340_p9), %1240, %v383_v0   ;;  %v798_v23 = vld [vmem:[%s1687_s8] sm:$0xff] (!%p340_p9)  ;;  %1130 = vmatprep.mubr.msk.f32.mxu0 (!%p340_p9), %vm559_vm0, %v531_v22  ;;  %s1017_s13 = sshll.u32 (!%p340_p9), %s377_s12, 4  ;;  %s1639_s13 = int_to_ptr.vmem [resolvable:$true] %s1017_s13 }
  0x17   : > { %v927_v25 = vld [vmem:[%s1688_s9] sm:$0xff]  ;;  %s379_s14 = scalar_select %p378_p10, %s1434_s21, 1 }
  0x18   : > { %v661_v36 = vld [vmem:[%s1684_s5] sm:$0xff]  ;;  %s1352_s21 = smov [#allocation2]  }
  0x19   : > { %1236 = vset.pattern.permute.xlu1 %v1350_v4  ;;  %s1081_s15 = sshll.u32 %s379_s14, 2  ;;  %1144 = vmatprep.mubr.msk.f32.mxu1 %vm559_vm0, %v661_v36  ;;  %s1288_s29 = sshll.u32 %s1352_s21, 4  ;;  %s1289_s29 = int_to_ptr.vmem [resolvable:$false] %s1288_s29 }
  0x1a   : > { %456 = vperm.xlu0 %1240, %v386_v5   ;;  %448 = vperm.xlu1 %1236, %v384_v3   ;;  %s381_s24 = scalar_lea.vmem %s1694_s0, %s1081_s15  ;;  %s1290_s0 = scalar_lea.vmem %s1289_s29, 64 }
  0x1b   : > { %v382_v40 = vld [vmem:[%s381_s24] sm:$0xf]  ;;  %s1284_s24 = scalar_lea.vmem %s1639_s13, 32  ;;  %p1291_p0 = scmp.lt.s32.totalorder %s1639_s13, %s1289_s29 }
  0x1c   : > { %v410_v42 = vrot.slane %v382_v40, %v409_v37  ;;  %v434_v44 = vrot.slane %v382_v40, %v433_v39  ;;  %v462_v50 = vrot.slane %v382_v40, %v461_v45  ;;  %v490_v52 = vrot.slane %v382_v40, %v489_v46  ;;  %p1285_p11 = scmp.ne.s32.totalorder %s1639_s13, %s1284_s24  ;;  %p1292_p1 = scmp.lt.s32.totalorder %s1290_s0, %s1284_s24 }
  0x1e   : > { %1243 = vset.pattern.permute.xlu0 %v1351_v7  ;;  %1237 = vset.pattern.permute.xlu1 %v1351_v7  ;;  %p1286_p12 = pnand %p1285_p11, %p1451_p5  ;;  %p1293_p2 = por %p1292_p1, %p1291_p0 }
  0x1f   : > { %389 = vperm.xlu0 %1243, %v383_v0   ;;  %399 = vperm.xlu1 %1237, %v385_v6  }
  0x20   : > { %p1287_p13 = pneg %p1286_p12 }
  0x22   : > { %p1294_p3 = pnand %p1293_p2, %p1287_p13 }
  0x23   : > { %394 = vperm.xlu0 %1243, %v384_v3   ;;  %1238 = vset.pattern.permute.xlu1 %v1349_v2 }
  0x24   : > { %424 = vperm.xlu1 %1238, %v385_v6  }
  0x27   : > { %404 = vperm.xlu0 %1243, %v386_v5  }
  0x28   : > { %428 = vperm.xlu1 %1238, %v386_v5  }
  0x2b   : > { %505 = vperm.xlu0 %1243, %v499_v8  }
  0x2c   : > { %1241 = vset.pattern.permute.xlu1 %v1348_v1 }
  0x2d   : > { %476 = vperm.xlu1 %1241, %v384_v3  }
  0x2f   : > { %520 = vperm.xlu0 %1243, %v502_v9  }
  0x31   : > { %1242 = vset.pattern.permute.xlu1 %v1350_v4 }
  0x32   : > { %452 = vperm.xlu1 %1242, %v385_v6  }
  0x33   : > { %546 = vperm.xlu0 %1243, %v536_v10  }
  0x36   : > { %1244 = vset.pattern.permute.xlu1 %v1348_v1 }
  0x37   : > { %556 = vperm.xlu0 %1243, %v538_v11   ;;  %480 = vperm.xlu1 %1244, %v385_v6  }
  0x3b   : > { %676 = vperm.xlu0 %1243, %v666_v12   ;;  %484 = vperm.xlu1 %1244, %v386_v5  }
  0x3f   : > { %686 = vperm.xlu0 %1243, %v668_v13   ;;  %1245 = vset.pattern.permute.xlu1 %v1351_v7 }
  0x40   : > { %510 = vperm.xlu1 %1245, %v500_v14  }
  0x43   : > { %809 = vperm.xlu0 %1243, %v799_v15  }
  0x44   : > { %515 = vperm.xlu1 %1245, %v501_v16  }
  0x47   : > { %819 = vperm.xlu0 %1243, %v801_v17  }
  0x48   : > { %541 = vperm.xlu1 %1245, %v535_v18  }
  0x4b   : > { %1247 = vset.pattern.permute.xlu0 %v1349_v2 }
  0x4c   : > { %551 = vperm.xlu1 %1245, %v537_v19  }
  0x50   : > { %671 = vperm.xlu1 %1245, %v665_v20  }
  0x54   : > { %681 = vperm.xlu1 %1245, %v667_v21  }
  0x58   : > { %804 = vperm.xlu1 %1245, %v798_v23  }
  0x5c   : > { %814 = vperm.xlu1 %1245, %v800_v24  }
  0x60   : > { %933 = vperm.xlu1 %1245, %v927_v25  }
  0x64   : > { %1246 = vset.pattern.permute.xlu1 %v1349_v2 }
  0x65   : > { %965 = vperm.xlu1 %1246, %v927_v25  }
  0x69   : > { %1249 = vset.pattern.permute.xlu1 %v1351_v7 }
  0x90   : > { %v417_v26 = vpop.permute.xlu1 %416  ;;  %v473_v27 = vpop.permute.xlu0 %472 }
  0x91   : > { %v435_v49 = vmul.f32 %v434_v44, %v417_v26  ;;  %v491_v60 = vmul.f32 %v490_v52, %v473_v27 }
  0x94   : > { %v421_v28 = vpop.permute.xlu1 %420 }
  0x95   : > { %v445_v29 = vpop.permute.xlu0 %444  ;;  %v436_v58 = vmul.f32 %v434_v44, %v421_v28 }
  0x96   : > { %v463_v53 = vmul.f32 %v462_v50, %v445_v29 }
  0x99   : > { %v449_v30 = vpop.permute.xlu1 %448  ;;  %v457_v31 = vpop.permute.xlu0 %456 }
  0x9a   : > { %v466_v61 = vmul.f32 %v462_v50, %v457_v31  ;;  %v464_v1 = vmul.f32 %v462_v50, %v449_v30 }
  0x9e   : > { %v400_v32 = vpop.permute.xlu1 %399  ;;  %v390_v35 = vpop.permute.xlu0 %389 }
  0x9f   : > { %v411_v47 = vmul.f32 %v410_v42, %v390_v35  ;;  %v413_v11 = vmul.f32 %v410_v42, %v400_v32  ;;  %v534_v35 = vld [vmem:[%s1682_s3 + $0x18] sm:$0xff] }
  0xa1   : > { %v439_v54 = vadd.f32 %v435_v49, %v411_v47 }
  0xa2   : > { %v395_v41 = vpop.permute.xlu0 %394 }
  0xa3   : > { %v425_v34 = vpop.permute.xlu1 %424  ;;  %v412_v57 = vmul.f32 %v410_v42, %v395_v41  ;;  %v467_v63 = vadd.f32 %v463_v53, %v439_v54 }
  0xa4   : > { %v437_v3 = vmul.f32 %v434_v44, %v425_v34  ;;  %v533_v34 = vld [vmem:[%s1682_s3 + $0x10] sm:$0xff] }
  0xa5   : > { %v440_v0 = vadd.f32 %v436_v58, %v412_v57  ;;  %v495_v8 = vadd.f32 %v491_v60, %v467_v63  ;;  %v664_v57 = vld [vmem:[%s1684_s5 + $0x18] sm:$0xff]  ;;  %v794_v58 = vld [vmem:[%s1686_s7] sm:$0xff]  ;;  %v928_v60 = vld [vmem:[%s1688_s9 + $0x8] sm:$0xff] }
  0xa6   : > { %v405_v48 = vpop.permute.xlu0 %404  ;;  %v441_v16 = vadd.f32 %v437_v3, %v413_v11  ;;  %969 = vperm.xlu0 %1247, %v928_v60   ;;  %v995_v63 = vld [vmem:[%s1689_s10] sm:$0x3] }
  0xa7   : > { %v429_v38 = vpop.permute.xlu1 %428  ;;  %v414_v55 = vmul.f32 %v410_v42, %v405_v48  ;;  %v468_v13 = vadd.f32 %v464_v1, %v440_v0 }
  0xa8   : > { %v438_v56 = vmul.f32 %v434_v44, %v429_v38 }
  0xaa   : > { %v442_v62 = vadd.f32 %v438_v56, %v414_v55  ;;  %v506_v4 = vpop.permute.xlu0 %505  ;;  %v662_v55 = vld [vmem:[%s1684_s5 + $0x8] sm:$0xff]  ;;  %v663_v56 = vld [vmem:[%s1684_s5 + $0x10] sm:$0xff]  ;;  %1248 = vset.pattern.permute.xlu0 %v1351_v7 }
  0xab   : > { %v523_v14 = vadd.f32 %v506_v4, %v495_v8  ;;  %938 = vperm.xlu0 %1248, %v928_v60  }
  0xac   : > { %v477_v43 = vpop.permute.xlu1 %476  ;;  %v470_v9 = vadd.f32 %v466_v61, %v442_v62  ;;  %v929_v61 = vld [vmem:[%s1688_s9 + $0x10] sm:$0xff]  ;;  %v930_v62 = vld [vmem:[%s1688_s9 + $0x18] sm:$0xff] }
  0xad   : > { %v492_v5 = vmul.f32 %v490_v52, %v477_v43  ;;  %1252 = vtanh.f32 %v523_v14  ;;  %943 = vperm.xlu1 %1249, %v929_v61  }
  0xae   : > { %v521_v20 = vpop.permute.xlu0 %520 }
  0xaf   : > { %v496_v18 = vadd.f32 %v492_v5, %v468_v13  ;;  %948 = vperm.xlu0 %1248, %v930_v62  }
  0xb1   : > { %v453_v51 = vpop.permute.xlu1 %452  ;;  %1250 = vset.pattern.permute.xlu1 %v1349_v2 }
  0xb2   : > { %v465_v12 = vmul.f32 %v462_v50, %v453_v51  ;;  %v547_v37 = vpop.permute.xlu0 %546  ;;  %973 = vperm.xlu1 %1250, %v929_v61  }
  0xb4   : > { %v469_v21 = vadd.f32 %v465_v12, %v441_v16 }
  0xb6   : > { %v481_v59 = vpop.permute.xlu1 %480  ;;  %v557_v43 = vpop.permute.xlu0 %556  ;;  %977 = vperm.xlu1 %1250, %v930_v62  }
  0xb7   : > { %v493_v17 = vmul.f32 %v490_v52, %v481_v59  ;;  %v1541_v27 = vpop.eup %1252  ;;  %v796_v59 = vld [vmem:[%s1686_s7 + $0x10] sm:$0xff] }
  0xb9   : > { %v497_v24 = vadd.f32 %v493_v17, %v469_v21 }
  0xba   : > { %v485_v6 = vpop.permute.xlu1 %484  ;;  %1251 = vset.pattern.permute.xlu1 %v1351_v7  ;;  %v677_v0 = vpop.permute.xlu0 %676 }
  0xbb   : > { %v494_v10 = vmul.f32 %v490_v52, %v485_v6  ;;  %998 = vperm.xlu1 %1251, %v995_v63  }
  0xbd   : > { %v498_v15 = vadd.f32 %v494_v10, %v470_v9 }
  0xbe   : > { %v687_v6 = vpop.permute.xlu0 %686 }
  0xbf   : > { %v511_v19 = vpop.permute.xlu1 %510  ;;  %v526_v23 = vadd.f32 %v521_v20, %v498_v15 }
  0xc0   : > { %v524_v22 = vadd.f32 %v511_v19, %v496_v18 }
  0xc2   : > { %1254 = vtanh.f32 %v524_v22  ;;  %v795_v22 = vld [vmem:[%s1686_s7 + $0x8] sm:$0xff] }
  0xc3   : > { %v516_v25 = vpop.permute.xlu1 %515  ;;  %1256 = vtanh.f32 %v526_v23  ;;  %v797_v23 = vld [vmem:[%s1686_s7 + $0x18] sm:$0xff] }
  0xc4   : > { %v525_v26 = vadd.f32 %v516_v25, %v497_v24 }
  0xc6   : > { %1258 = vtanh.f32 %v525_v26  ;;  %v810_v26 = vpop.permute.xlu0 %809 }
  0xc7   : > { %v542_v38 = vpop.permute.xlu1 %541 }
  0xcb   : > { %v552_v45 = vpop.permute.xlu1 %551 }
  0xcc   : > { %v1543_v28 = vpop.eup %1254 }
  0xcd   : > { %v1164_v29 = vpack.c.bf16 %v1543_v28, %v1541_v27  ;;  %v1547_v30 = vpop.eup %1256 }
  0xcf   : > { %1165 = vmatprep.subr.bf16.mxu0 %v1164_v29  ;;  %v672_v1 = vpop.permute.xlu1 %671 }
  0xd0   : > { %v1549_v31 = vpop.eup %1258  ;;  %1167 = vmatpush3.bf16.msra.mxu0 %v1164_v29 }
  0xd1   : > { %v1168_v32 = vpack.c.bf16 %v1547_v30, %v1549_v31 }
  0xd3   : > { %1169 = vmatprep.subr.bf16.mxu0 %v1168_v32  ;;  %v682_v9 = vpop.permute.xlu1 %681 }
  0xd4   : > { %1171 = vmatpush3.bf16.msra.mxu0 %v1168_v32 }
  0xd7   : > { %1131 = vmatmul.mubr.msk.f32.vlgmr.msra.gmra.mrb[0].mxu0 %vm559_vm0, %v532_v33  ;;  %v805_v24 = vpop.permute.xlu1 %804 }
  0xd8   : > { %1133 = vmatprep.mubr.msk.f32.mxu0 %vm559_vm0, %v533_v34 }
  0xdb   : > { %1134 = vmatmul.mubr.msk.f32.gmra.mrb[2].mxu0 %vm559_vm0, %v534_v35  ;;  %v815_v25 = vpop.permute.xlu1 %814 }
  0xdc   : > { %1158 = vmatprep.mubr.msk.f32.mxu0 %vm559_vm0, %v794_v58 }
 0x1aa   : > { %v1132_v39 = vpop.f32.mrb[0].mxu0 }
 0x1ab   : > { %v644_v40 = vadd.f32 %v1132_v39, %v547_v37  ;;  %v638_v41 = vpop.f32.mrb[1].mxu0 }
 0x1ac   : > { %v639_v42 = vadd.f32 %v638_v41, %v542_v38 }
 0x1ad   : > { %1260 = vtanh.f32 %v644_v40 }
 0x1ae   : > { %1262 = vtanh.f32 %v639_v42  ;;  %v1135_v44 = vpop.f32.mrb[2].mxu0 }
 0x1af   : > { %v654_v46 = vadd.f32 %v1135_v44, %v557_v43  ;;  %v648_v47 = vpop.f32.mrb[3].mxu0 }
 0x1b0   : > { %v649_v48 = vadd.f32 %v648_v47, %v552_v45 }
 0x1b1   : > { %1264 = vtanh.f32 %v654_v46 }
 0x1b2   : > { %1266 = vtanh.f32 %v649_v48 }
 0x1b7   : > { %v1569_v49 = vpop.eup %1260 }
 0x1b8   : > { %v1571_v50 = vpop.eup %1262 }
 0x1b9   : > { %v1172_v51 = vpack.c.bf16 %v1569_v49, %v1571_v50 }
 0x1bb   : > { %v1575_v52 = vpop.eup %1264  ;;  %1173 = vmatprep.subr.bf16.mxu1 %v1172_v51 }
 0x1bc   : > { %v1577_v53 = vpop.eup %1266  ;;  %1175 = vmatpush3.bf16.msra.mxu1 %v1172_v51 }
 0x1bd   : > { %v1176_v54 = vpack.c.bf16 %v1575_v52, %v1577_v53 }
 0x1bf   : > { %1177 = vmatprep.subr.bf16.mxu1 %v1176_v54 }
 0x1c0   : > { %1179 = vmatpush3.bf16.msra.mxu1 %v1176_v54 }
 0x1c3   : > { %1145 = vmatmul.mubr.msk.f32.vlgmr.msra.gmra.mrb[0].mxu1 %vm559_vm0, %v662_v55 }
 0x1c4   : > { %1147 = vmatprep.mubr.msk.f32.mxu1 %vm559_vm0, %v663_v56 }
 0x1c7   : > { %1148 = vmatmul.mubr.msk.f32.gmra.mrb[2].mxu1 %vm559_vm0, %v664_v57 }
 0x1c8   : > { %1161 = vmatprep.mubr.msk.f32.mxu1 %vm559_vm0, %v796_v59 }
 0x296   : > { %v1146_v3 = vpop.f32.mrb[0].mxu1 }
 0x297   : > { %v773_v4 = vadd.f32 %v1146_v3, %v677_v0  ;;  %v767_v2 = vpop.f32.mrb[1].mxu1 }
 0x298   : > { %v768_v5 = vadd.f32 %v767_v2, %v672_v1 }
 0x299   : > { %1268 = vtanh.f32 %v773_v4 }
 0x29a   : > { %1270 = vtanh.f32 %v768_v5  ;;  %v1149_v8 = vpop.f32.mrb[2].mxu1 }
 0x29b   : > { %v783_v10 = vadd.f32 %v1149_v8, %v687_v6  ;;  %v777_v11 = vpop.f32.mrb[3].mxu1 }
 0x29c   : > { %v778_v12 = vadd.f32 %v777_v11, %v682_v9 }
 0x29d   : > { %1272 = vtanh.f32 %v783_v10 }
 0x29e   : > { %1274 = vtanh.f32 %v778_v12 }
 0x2a3   : > { %v1269_v13 = vpop.eup %1268 }
 0x2a4   : > { %v1271_v14 = vpop.eup %1270  ;;  %v791_v7 = vadd.f32 %v1269_v13, %v1543_v28  ;;  %v820_v28 = vpop.permute.xlu0 %819 }
 0x2a5   : > { %v790_v15 = vadd.f32 %v1271_v14, %v1541_v27  ;;  %v934_v27 = vpop.permute.xlu1 %933 }
 0x2a7   : > { %v1273_v16 = vpop.eup %1272  ;;  %v1180_v17 = vpack.c.bf16 %v791_v7, %v790_v15 }
 0x2a8   : > { %v1275_v18 = vpop.eup %1274  ;;  %v793_v19 = vadd.f32 %v1273_v16, %v1547_v30  ;;  %v970_v38 = vpop.permute.xlu0 %969 }
 0x2a9   : > { %1181 = vmatprep.subr.bf16.mxu0 %v1180_v17  ;;  %1188 = vmatprep.subr.bf16.mxu1 %v1180_v17  ;;  %v792_v20 = vadd.f32 %v1275_v18, %v1549_v31  ;;  %v966_v29 = vpop.permute.xlu1 %965 }
 0x2aa   : > { %1183 = vmatpush3.bf16.msra.mxu0 %v1180_v17  ;;  %1190 = vmatpush3.bf16.msra.mxu1 %v1180_v17 }
 0x2ab   : > { %v1184_v21 = vpack.c.bf16 %v793_v19, %v792_v20 }
 0x2ac   : > { %v939_v41 = vpop.permute.xlu0 %938 }
 0x2ad   : > { %1185 = vmatprep.subr.bf16.mxu0 %v1184_v21  ;;  %1189 = vmatprep.subr.bf16.mxu1 %v1184_v21  ;;  %v944_v39 = vpop.permute.xlu1 %943 }
 0x2ae   : > { %1187 = vmatpush3.bf16.msra.mxu0 %v1184_v21  ;;  %1191 = vmatpush3.bf16.msra.mxu1 %v1184_v21 }
 0x2b0   : > { %v949_v58 = vpop.permute.xlu0 %948 }
 0x2b1   : > { %1159 = vmatmul.mubr.msk.f32.vlgmr.msra.gmra.mrb[4].mxu0 %vm559_vm0, %v795_v22  ;;  %1162 = vmatmul.mubr.msk.f32.vlgmr.msra.gmra.mrb[4].mxu1 %vm559_vm0, %v797_v23  ;;  %v974_v42 = vpop.permute.xlu1 %973 }
 0x2b5   : > { %v978_v59 = vpop.permute.xlu1 %977 }
 0x2b9   : > { %v999_v13 = vpop.permute.xlu1 %998 }
 0x384   : > { %v1160_v30 = vpop.f32.mrb[4].mxu0  ;;  %v1163_v31 = vpop.f32.mrb[4].mxu1 }
 0x385   : > { %v906_v32 = vadd.f32 %v1160_v30, %v810_v26  ;;  %v916_v33 = vadd.f32 %v1163_v31, %v820_v28  ;;  %v900_v34 = vpop.f32.mrb[5].mxu0  ;;  %v910_v35 = vpop.f32.mrb[5].mxu1 }
 0x386   : > { %v901_v36 = vadd.f32 %v900_v34, %v805_v24  ;;  %v911_v37 = vadd.f32 %v910_v35, %v815_v25 }
 0x387   : > { %1276 = vtanh.f32 %v906_v32 }
 0x388   : > { %1278 = vtanh.f32 %v916_v33 }
 0x389   : > { %1280 = vtanh.f32 %v901_v36 }
 0x38a   : > { %1282 = vtanh.f32 %v911_v37 }
 0x391   : > { %v1277_v40 = vpop.eup %1276 }
 0x392   : > { %v1279_v43 = vpop.eup %1278  ;;  %v924_v44 = vadd.f32 %v1277_v40, %v1569_v49 }
 0x393   : > { %v1281_v45 = vpop.eup %1280  ;;  %v926_v57 = vadd.f32 %v1279_v43, %v1575_v52 }
 0x394   : > { %v1283_v46 = vpop.eup %1282  ;;  %v923_v47 = vadd.f32 %v1281_v45, %v1571_v50  ;;  %v981_v48 = vmul.f32 %v970_v38, %v924_v44  ;;  %v952_v51 = vmul.f32 %v939_v41, %v924_v44 }
 0x395   : > { %v925_v54 = vadd.f32 %v1283_v46, %v1577_v53  ;;  %v954_v0 = vmul.f32 %v949_v58, %v926_v57  ;;  %v983_v3 = vmul.f32 %v978_v59, %v926_v57 }
 0x396   : > { %v980_v55 = vmul.f32 %v966_v29, %v923_v47  ;;  %v951_v56 = vmul.f32 %v934_v27, %v923_v47 }
 0x397   : > { %v953_v61 = vmul.f32 %v944_v39, %v925_v54  ;;  %v982_v63 = vmul.f32 %v974_v42, %v925_v54 }
 0x398   : > { %v984_v60 = vadd.f32 %v981_v48, %v980_v55  ;;  %v955_v62 = vadd.f32 %v952_v51, %v951_v56 }
 0x39a   : > { %v985_v49 = vadd.f32 %v984_v60, %v982_v63  ;;  %v956_v1 = vadd.f32 %v955_v62, %v953_v61 }
 0x39c   : > { %v957_v50 = vadd.f32 %v956_v1, %v954_v0  ;;  %v986_v4 = vadd.f32 %v985_v49, %v983_v3 }
 0x39e   : > { %v958_v2 = vrot.slane %v957_v50, 4  ;;  %v987_v53 = vrot.slane %v986_v4, 4 }
 0x3a0   : > { %v959_v5 = vadd.f32 %v958_v2, %v957_v50  ;;  %v988_v6 = vadd.f32 %v987_v53, %v986_v4 }
 0x3a2   : > { %v960_v8 = vrot.slane %v959_v5, 2  ;;  %v989_v52 = vrot.slane %v988_v6, 2 }
 0x3a4   : > { %v961_v9 = vadd.f32 %v960_v8, %v959_v5  ;;  %v990_v10 = vadd.f32 %v989_v52, %v988_v6 }
 0x3a6   : > { %v962_v11 = vrot.slane %v961_v9, 1  ;;  %v991_v12 = vrot.slane %v990_v10, 1 }
 0x3a8   : > { %v963_v14 = vadd.f32 %v962_v11, %v961_v9  ;;  %v992_v7 = vadd.f32 %v991_v12, %v990_v10 }
 0x3aa   : > { %v994_v15 = vsel %vm993_vm1, %v963_v14, %v992_v7 }
 0x3ab   : > { %v1001_v16 = vadd.f32 %v999_v13, %v994_v15 }
 0x3ad   : > { %1002 = vst [vmem:[%s377_s12] sm:$0x3] %v1001_v16 }
 0x3ae   : > { %1297 = shalt.err (!%p1294_p3)
}
 0x3af   : > { %s1298_s25 = scalar_lea.hbm %s1637_s16, 32  ;;  %s1302_s14 = scalar_lea.hbm %s1690_s11, 64 }
 0x3b0   : > { %p1299_p4 = scmp.ne.s32.totalorder %s1637_s16, %s1298_s25  ;;  %p1303_p9 = scmp.lt.u32.totalorder %s1637_s16, %s1690_s11 }
 0x3b1   : > { %p1304_p10 = scmp.lt.u32.totalorder %s1302_s14, %s1298_s25  ;;  %p1306_p12 = scmp.lt.u32.totalorder %s1298_s25, %s1637_s16 }
 0x3b2   : > { %p1300_p7 = pnand %p1299_p4, %p1451_p5 }
 0x3b3   : > { %p1305_p11 = por %p1304_p10, %p1303_p9 }
 0x3b4   : > { %p1301_p8 = pneg %p1300_p7 }
 0x3b5   : > { %p1307_p13 = por %p1306_p12, %p1305_p11 }
 0x3b7   : > { %p1308_p0 = pnand %p1307_p13, %p1301_p8 }
 0x3b9   : > { %1311 = shalt.err (!%p1308_p0)
}
 0x3ba   : > { %1192 = dma.vmem_to_hbm [thread:$0]  (%p1451_p5), %s1639_s13, 32, %s1637_s16, %s1004_s22  }
 0x3bb PF: > { %p1198_p1 = scmp.ge.s32.totalorder %s1346_s20, 2  ;;  %s1029_s0 = sand.u32 1, %s1334_s17  }
 0x3bc   : > { %s1030_s24 = scalar_lea.sflag [#allocation3], %s1029_s0 }
 0x3bd   : > { %p1195_p2 = pnand %p1198_p1, %p1455_p6 }
 0x3bf   : > { %1329 = dma.done.wait (!%p1195_p2), %s1030_s24, 32  }
 0x3c0   : > { %1331 = vsyncadd (!%p1195_p2), %s1030_s24, 4294967264  ;;  %p21_p3 = scmp.ge.s32.totalorder %s1438_s23, 4   ;;  %s1695_s17 = smov %s1338_s18 }
 0x3c1   : > { %s1696_s18 = smov %s1342_s19  ;;  %s1697_s19 = smov %s1449_s26 }
 0x3c2   : > { %s1698_s20 = smov %s1438_s23  ;;  %23 = sbr.rel (!%p21_p3) target bundleno = 5 (0x5), region = 99 }
 0x3c9   :  { %1035 = vsyncpa [#allocation3], 1 }
 0x3ca   :  { %1037 = vsyncpa [#allocation3 + $0x1], 1 }

</bundles_post_ra>
